<compile_context>
chip_gen: v6e
topology: v6e:2x2x1
jax: 0.10.0
libtpu: 0.0.40
codegen_flags: <defaults>
</compile_context>

<pallas_src>
import jax
import jax.numpy as jnp
from jax.experimental import pallas as pl
from jax.experimental.pallas import tpu as pltpu


def _round_up(n, m):
    return -(-n // m) * m


def _vmem_footprint_bytes(tb, D, itemsize):
    """Double-buffered VMEM footprint of one grid step (padded tile sizes)."""
    dp = _round_up(D, 128)                       # lane-padded x-tile width
    x_tile = _round_up(tb, 8) * dp * itemsize    # (tb, D) input tile
    o_tile = 16 * _round_up(tb, 128) * 4         # (9, tb) f32 output tile
    w_res = (8 * dp + 8 * 128) * 4               # resident W + bias
    return 2 * (x_tile + o_tile) + w_res


def _pick_batch_tile(B, D, itemsize, vmem_budget=16 * 1024 * 1024):
    """Largest lane-aligned batch tile fitting the budget, >=2 grid steps if possible."""
    if B <= 128:
        return B                                 # full-array block (exempt from (8,128) rule)
    # Cap so v7x's two TensorCores both get a grid step when B is large.
    cap = max(128, _round_up(pl.cdiv(B, 2), 128))
    for cand in (8192, 4096, 2048, 1024, 512, 256, 128):
        if cand <= cap and _vmem_footprint_bytes(cand, D, itemsize) <= vmem_budget:
            return cand
    return 128


def _euler_yzy_kernel(w_ref, b_ref, x_ref, out_ref):
    # mu: (3, TB) = W(3, D) contracted with x_tile(TB, D) over D (NT matmul on
    # the MXU; no transpose of x anywhere), plus bias broadcast along lanes.
    mu = jax.lax.dot_general(
        w_ref[...], x_ref[...],
        dimension_numbers=(((1,), (1,)), ((), ())),
        preferred_element_type=jnp.float32,
    ) + b_ref[...]

    # Packed trig: one cos / one sin over the whole (3, TB) tile, then slice.
    c = jnp.cos(mu)
    s = jnp.sin(mu)
    ca, cb, cg = c[0:1, :], c[1:2, :], c[2:3, :]
    sa, sb, sg = s[0:1, :], s[1:2, :], s[2:3, :]

    cacb = ca * cb
    sacb = sa * cb

    # R = R_y(alpha) @ R_z(beta) @ R_y(gamma), row-major; single full-tile store.
    # TODO(synk): rot_mat_tensor source unavailable; assuming the standard yzy
    # composition order R_y(a) R_z(b) R_y(g) with angle column order (a, b, g).
    out_ref[...] = jnp.concatenate(
        [cacb * cg - sa * sg,        # r00
         -ca * sb,                   # r01
         cacb * sg + sa * cg,        # r02
         sb * cg,                    # r10
         cb,                         # r11
         sb * sg,                    # r12
         -(sacb * cg + ca * sg),     # r20
         sa * sb,                    # r21
         ca * cg - sacb * sg],       # r22
        axis=0,
    )


def euler_yzy_mean_forward(x, w, b, *, batch_major=True):
    """x: (B, D); w: (3, D) (PyTorch Linear weight layout); b: (3,).

    Returns R = R_y(a) R_z(b) R_y(g) with (a, b, g) = x @ w.T + b:
      * batch_major=True  -> (B, 3, 3)  (module semantics; one extra transpose pass)
      * batch_major=False -> (3, 3, B)  (free reshape of the lane-dense slab)
    """
    B, D = x.shape
    assert w.shape == (3, D) and b.shape == (3,)

    # bf16 inputs are accepted as-is (halves the dominant HBM read if the
    # producer already emits bf16); everything after the MXU stays f32.
    if x.dtype != jnp.bfloat16:
        x = x.astype(jnp.float32)
    w = w.astype(x.dtype)
    b2 = b.astype(jnp.float32).reshape(3, 1)

    itemsize = x.dtype.itemsize
    tb = _pick_batch_tile(B, D, itemsize)
    grid = (pl.cdiv(B, tb),)

    footprint = _vmem_footprint_bytes(tb, D, itemsize)
    vmem_limit = int(min(100 * 2**20, max(2 * footprint, 4 * 2**20)))

    out_flat = pl.pallas_call(
        _euler_yzy_kernel,
        out_shape=jax.ShapeDtypeStruct((9, B), jnp.float32),
        grid=grid,
        in_specs=[
            pl.BlockSpec((3, D), lambda i: (0, 0)),    # W: resident across grid
            pl.BlockSpec((3, 1), lambda i: (0, 0)),    # b: resident across grid
            pl.BlockSpec((tb, D), lambda i: (i, 0)),   # x batch tile (no wrapper .T)
        ],
        out_specs=pl.BlockSpec((9, tb), lambda i: (0, i)),
        compiler_params=pltpu.CompilerParams(
            dimension_semantics=("parallel",),
            vmem_limit_bytes=vmem_limit,
        ),
    )(w, b2, x)

    if batch_major:
        # (9, B) -> (B, 3, 3): module-faithful layout (costs one HBM pass).
        return out_flat.T.reshape(B, 3, 3)
    # Free reshape of the lane-dense slab: R[i, j, batch] = out[3*i + j, batch].
    return out_flat.reshape(3, 3, B)


if __name__ == "__main__":
    key = jax.random.PRNGKey(0)
    k_x, k_w, k_b, k_x2 = jax.random.split(key, 4)

    def reference(x, w, b):
        mu = jnp.dot(x, w.T, precision=jax.lax.Precision.HIGHEST) + b
        a, be, g = mu[:, 0], mu[:, 1], mu[:, 2]

        def ry(t):
            c, s = jnp.cos(t), jnp.sin(t)
            z, o = jnp.zeros_like(t), jnp.ones_like(t)
            return jnp.stack([jnp.stack([c, z, s], -1),
                              jnp.stack([z, o, z], -1),
                              jnp.stack([-s, z, c], -1)], -2)

        def rz(t):
            c, s = jnp.cos(t), jnp.sin(t)
            z, o = jnp.zeros_like(t), jnp.ones_like(t)
            return jnp.stack([jnp.stack([c, -s, z], -1),
                              jnp.stack([s, c, z], -1),
                              jnp.stack([z, z, o], -1)], -2)

        return ry(a) @ rz(be) @ ry(g)

    # Match the module's init: Linear weight/bias ~ U(-10, 10).
    D = 16
    w = jax.random.uniform(k_w, (3, D), minval=-10.0, maxval=10.0, dtype=jnp.float32)
    b = jax.random.uniform(k_b, (3,), minval=-10.0, maxval=10.0, dtype=jnp.float32)

    # Case 1: small batch (single grid step, full-array block).
    x1 = 0.1 * jax.random.normal(k_x, (8, D), dtype=jnp.float32)
    R1 = jax.block_until_ready(euler_yzy_mean_forward(x1, w, b))
    assert R1.shape == (8, 3, 3)
    R1_ref = reference(x1, w, b)
    assert jnp.allclose(R1, R1_ref, atol=1e-3, rtol=1e-3), (
        f"case1 mismatch, max abs err = {float(jnp.max(jnp.abs(R1 - R1_ref)))}")

    # Case 2: multi-tile batch (exercises 128-lane tiling + 2-step parallel grid).
    x2 = 0.1 * jax.random.normal(k_x2, (256, D), dtype=jnp.float32)
    R2 = jax.block_until_ready(euler_yzy_mean_forward(x2, w, b))
    R2_ref = reference(x2, w, b)
    assert jnp.allclose(R2, R2_ref, atol=1e-3, rtol=1e-3), (
        f"case2 mismatch, max abs err = {float(jnp.max(jnp.abs(R2 - R2_ref)))}")

    # Lane-major path (skips the output transpose) agrees with batch-major path.
    R2_lane = jax.block_until_ready(
        euler_yzy_mean_forward(x2, w, b, batch_major=False))
    assert jnp.allclose(jnp.transpose(R2_lane, (2, 0, 1)), R2, atol=1e-6)

    # Sanity: outputs are (approximately) rotation matrices: R R^T = I.
    gram = jnp.einsum("bij,bkj->bik", R2, R2)
    assert jnp.allclose(gram, jnp.eye(3, dtype=jnp.float32)[None], atol=1e-3)

    print("KERNEL_OK")
</pallas_src>

<mosaic_0001>
module attributes {stable_mosaic.version = 11 : i64} {
  func.func @_euler_yzy_kernel(%arg0: i32, %arg1: memref<3x16xf32, #tpu.memory_space<vmem>>, %arg2: memref<3x1xf32, #tpu.memory_space<vmem>>, %arg3: memref<8x16xf32, #tpu.memory_space<vmem>>, %arg4: memref<9x8xf32, #tpu.memory_space<vmem>>) attributes {dimension_semantics = [#tpu.dimension_semantics<parallel>], iteration_bounds = array<i64: 1>, scalar_prefetch = 0 : i64, scratch_operands = 0 : i64, tpu.core_type = #tpu.core_type<tc>, window_params = [{pipeline_mode = #tpu.pipeline_mode<synchronous>, transform_indices = @transform_0, window_bounds = array<i64: 3, 16>}, {pipeline_mode = #tpu.pipeline_mode<synchronous>, transform_indices = @transform_1, window_bounds = array<i64: 3, 1>}, {transform_indices = @transform_2, window_bounds = array<i64: 8, 16>}, {transform_indices = @transform_3, window_bounds = array<i64: 9, 8>}]} {
    %c0 = arith.constant 0 : index
    %c0_0 = arith.constant 0 : index
    %0 = vector.load %arg1[%c0, %c0_0] : memref<3x16xf32, #tpu.memory_space<vmem>>, vector<3x16xf32>
    %c0_1 = arith.constant 0 : index
    %c0_2 = arith.constant 0 : index
    %1 = vector.load %arg3[%c0_1, %c0_2] : memref<8x16xf32, #tpu.memory_space<vmem>>, vector<8x16xf32>
    %cst = arith.constant dense<0.000000e+00> : vector<3x8xf32>
    %2 = tpu.matmul %0, %1, %cst {dimension_numbers = #tpu.dot_dimension_numbers<[1], [1], [0], [0], [0, 0, 1, 0], [], []>} : vector<3x16xf32>, vector<8x16xf32>, vector<3x8xf32> -> vector<3x8xf32>
    %c0_3 = arith.constant 0 : index
    %c0_4 = arith.constant 0 : index
    %3 = vector.load %arg2[%c0_3, %c0_4] : memref<3x1xf32, #tpu.memory_space<vmem>>, vector<3x1xf32>
    %4 = vector.broadcast %3 : vector<3x1xf32> to vector<3x8xf32>
    %5 = arith.addf %2, %4 : vector<3x8xf32>
    %6 = math.cos %5 : vector<3x8xf32>
    %7 = math.sin %5 : vector<3x8xf32>
    %8 = vector.extract_strided_slice %6 {offsets = [0, 0], sizes = [1, 8], strides = [1, 1]} : vector<3x8xf32> to vector<1x8xf32>
    %9 = vector.extract_strided_slice %6 {offsets = [1, 0], sizes = [1, 8], strides = [1, 1]} : vector<3x8xf32> to vector<1x8xf32>
    %10 = vector.extract_strided_slice %6 {offsets = [2, 0], sizes = [1, 8], strides = [1, 1]} : vector<3x8xf32> to vector<1x8xf32>
    %11 = vector.extract_strided_slice %7 {offsets = [0, 0], sizes = [1, 8], strides = [1, 1]} : vector<3x8xf32> to vector<1x8xf32>
    %12 = vector.extract_strided_slice %7 {offsets = [1, 0], sizes = [1, 8], strides = [1, 1]} : vector<3x8xf32> to vector<1x8xf32>
    %13 = vector.extract_strided_slice %7 {offsets = [2, 0], sizes = [1, 8], strides = [1, 1]} : vector<3x8xf32> to vector<1x8xf32>
    %14 = arith.mulf %8, %9 : vector<1x8xf32>
    %15 = arith.mulf %11, %9 : vector<1x8xf32>
    %16 = arith.mulf %14, %10 : vector<1x8xf32>
    %17 = arith.mulf %11, %13 : vector<1x8xf32>
    %18 = arith.subf %16, %17 : vector<1x8xf32>
    %cst_5 = arith.constant 0.000000e+00 : f32
    %19 = vector.broadcast %cst_5 : f32 to vector<1x8xf32>
    %20 = arith.subf %19, %8 : vector<1x8xf32>
    %21 = arith.mulf %20, %12 : vector<1x8xf32>
    %22 = arith.mulf %14, %13 : vector<1x8xf32>
    %23 = arith.mulf %11, %10 : vector<1x8xf32>
    %24 = arith.addf %22, %23 : vector<1x8xf32>
    %25 = arith.mulf %12, %10 : vector<1x8xf32>
    %26 = arith.mulf %12, %13 : vector<1x8xf32>
    %27 = arith.mulf %15, %10 : vector<1x8xf32>
    %28 = arith.mulf %8, %13 : vector<1x8xf32>
    %29 = arith.addf %27, %28 : vector<1x8xf32>
    %cst_6 = arith.constant 0.000000e+00 : f32
    %30 = vector.broadcast %cst_6 : f32 to vector<1x8xf32>
    %31 = arith.subf %30, %29 : vector<1x8xf32>
    %32 = arith.mulf %11, %12 : vector<1x8xf32>
    %33 = arith.mulf %8, %10 : vector<1x8xf32>
    %34 = arith.mulf %15, %13 : vector<1x8xf32>
    %35 = arith.subf %33, %34 : vector<1x8xf32>
    %36 = tpu.concatenate %18, %21, %24, %25, %9, %26, %31, %32, %35 in 0 : vector<1x8xf32>, vector<1x8xf32>, vector<1x8xf32>, vector<1x8xf32>, vector<1x8xf32>, vector<1x8xf32>, vector<1x8xf32>, vector<1x8xf32>, vector<1x8xf32> -> vector<9x8xf32>
    %c0_7 = arith.constant 0 : index
    %c0_8 = arith.constant 0 : index
    %37 = vector.load %arg4[%c0_7, %c0_8] : memref<9x8xf32, #tpu.memory_space<vmem>>, vector<9x8xf32>
    tpu.vector_store %arg4[%c0_7, %c0_8], %36 {strides = array<i32>} : memref<9x8xf32, #tpu.memory_space<vmem>>, vector<9x8xf32>,
    return
  }
  func.func @transform_0(%arg0: i32) -> (i32, i32) {
    %c0_i32 = arith.constant 0 : i32
    %c0_i32_0 = arith.constant 0 : i32
    %c0_i32_1 = arith.constant 0 : i32
    return %c0_i32, %c0_i32_0 : i32, i32
  }
  func.func @transform_1(%arg0: i32) -> (i32, i32) {
    %c0_i32 = arith.constant 0 : i32
    %c0_i32_0 = arith.constant 0 : i32
    %c0_i32_1 = arith.constant 0 : i32
    return %c0_i32, %c0_i32_0 : i32, i32
  }
  func.func @transform_2(%arg0: i32) -> (i32, i32) {
    %c0_i32 = arith.constant 0 : i32
    %c0_i32_0 = arith.constant 0 : i32
    return %arg0, %c0_i32 : i32, i32
  }
  func.func @transform_3(%arg0: i32) -> (i32, i32) {
    %c0_i32 = arith.constant 0 : i32
    %c0_i32_0 = arith.constant 0 : i32
    return %c0_i32, %arg0 : i32, i32
  }
}

</mosaic_0001>

<bundles_post_ra>
// kernel: tpu_custom_call.1
= control target key start
LH: loop header
LB: loop body
LE: loop exit
PB: predicated region body
PF: predicated region fallthrough
CT: control target
= control target key end

     0   :  { %8 = vsyncpa [#allocation3], 0  ;;  %s446_s12 = smov [#allocation2]   ;;  %s512_s0 = inlined_call_operand.hbm [shape: f32[3,16], index: 0, kind: input, shape index: {}]   ;;  %s513_s1 = inlined_call_operand.vmem [shape: f32[3,1], index: 1, kind: input, shape index: {}]   ;;  %s514_s2 = inlined_call_operand.vmem [shape: f32[8,16], index: 2, kind: input, shape index: {}]   ;;  %s515_s3 = inlined_call_operand.vmem [shape: f32[9,8], index: 3, kind: output, shape index: {}]  }
   0x1   :  { %s15_s13 = sshll.u32 %s446_s12, 4  ;;  %s16_s13 = int_to_ptr.vmem [resolvable:$true] %s15_s13 }
   0x2   :  { %s432_s14 = scalar_lea.vmem %s16_s13, 64  ;;  %p437_p1 = scmp.lt.s32.totalorder %s16_s13, %s16_s13 }
   0x3   :  { %p433_p0 = scmp.ne.s32.totalorder %s16_s13, %s432_s14  ;;  %p438_p2 = scmp.lt.s32.totalorder %s432_s14, %s432_s14 }
   0x5   :  { %p439_p3 = por %p438_p2, %p437_p1 }
   0x7   :  { %p440_p4 = pnand %p439_p3, %p433_p0 }
   0x9   :  { %443 = shalt.err (!%p440_p4)
}
   0xa   :  { %18 = dma.hbm_to_vmem [thread:$0]  %s512_s0, 64, %s16_s13, [#allocation3]  }
   0xb   :  { %444 = dma.done.wait [#allocation3], 64  }
   0xc   :  { %445 = vsyncadd [#allocation3], 4294967232  ;;  %v447_v0 = vmov 0.0   ;;  %vm448_vm0 = vmmov 0   ;;  %v449_v1 = vmov 0   ;;  %vm34_vm1 = vcmask 130048  }
   0xd   :  { %400 = vmatprep.subr.mxu0 %v447_v0  ;;  %402 = vmatprep.mubr.msk.f32.mxu0 %vm448_vm0, %v447_v0  ;;  %v27_v2 = vld [vmem:[%s514_s2] sm:$0xff]  ;;  %v450_v19 = vmov 683565275   ;;  %v451_v21 = vmov 2475754826  }
   0xe   :  { %419 = vset.pattern.permute.xlu0 %v449_v1  ;;  %v28_v3 = vld [vmem:[%s513_s1] sm:$0x7]  ;;  %401 = vmatpush3.xpose.msk.msra.mxu0 %vm34_vm1, %v27_v2  ;;  %v452_v24 = vmov 2131351028   ;;  %v453_v27 = vmov 2102212464  }
   0xf   :  { %v26_v4 = vld [vmem:[#allocation2] sm:$0x7]  ;;  %31 = vperm.xlu0 %419, %v28_v3   ;;  %v454_v30 = vmov 920167782   ;;  %v455_v33 = vmov 1326507024  }
  0x11   :  { %403 = vmatmul.mubr.msk.f32.vlgmr.msra.gmra.mxu0 %vm34_vm1, %v26_v4 }
  0x8a   :  { %v32_v5 = vpop.permute.xlu0 %31 }
  0xd1   :  { %v107_v6 = vpop.f32.mrf.mxu0 }
  0xd2   :  { %v485_v7 = vadd.f32 %v107_v6, %v32_v5 }
  0xd3   :  { %v404_v8 = vpop.f32.mrf.mxu0 }
  0xd4   :  { %v114_v9 = vand.u32 2139095040, %v485_v7  ;;  %v111_v13 = vand.u32 2147483647, %v485_v7  ;;  %vm113_vm9 = vcmp.lt.s32.totalorder %v485_v7, 0  ;;  %vm203_vm1 = vweird.f32 %v485_v7 }
  0xd6   :  { %v115_v10 = vshrl.u32 %v114_v9, 23  ;;  %v118_v16 = vand.u32 8388607, %v111_v13  ;;  %vm112_vm10 = vcmp.le.f32.partialorder %v111_v13, 0.7853982 }
  0xd8   :  { %v390_v11 = vadd.s32 4294967169, %v115_v10  ;;  %v119_v35 = vor.u32 8388608, %v118_v16 }
  0xda   :  { %v121_v12 = vadd.s32 1, %v390_v11  ;;  %v159_v49 = vshll.u32 %v119_v35, 8 }
  0xdc   :  { %vm122_vm2 = vcmp.gt.s32.totalorder %v121_v12, 0 }
  0xdd   :  { %v123_v14 = vsel %vm122_vm2, %v121_v12, 0  ;;  %vm365_vm2 = vcmask 1040384  }
  0xde   :  { %v125_v15 = vand.u32 31, %v123_v14  ;;  %v124_v18 = vshrl.u32 %v123_v14, 5 }
  0xe0   :  { %v126_v17 = vsub.s32 32, %v125_v15  ;;  %v128_v20 = vshll.u32 %v450_v19, %v125_v15  ;;  %v131_v22 = vshll.u32 %v451_v21, %v125_v15  ;;  %v134_v26 = vshll.u32 %v452_v24, %v125_v15 }
  0xe1   :  { %v137_v29 = vshll.u32 %v453_v27, %v125_v15  ;;  %v140_v32 = vshll.u32 %v454_v30, %v125_v15  ;;  %vm143_vm3 = vcmp.lt.s32.totalorder %v124_v18, 1  ;;  %vm146_vm4 = vcmp.lt.s32.totalorder %v124_v18, 4 }
  0xe2   :  { %v129_v23 = vshrl.u32 %v451_v21, %v126_v17  ;;  %v132_v25 = vshrl.u32 %v452_v24, %v126_v17  ;;  %v135_v28 = vshrl.u32 %v453_v27, %v126_v17  ;;  %v138_v31 = vshrl.u32 %v454_v30, %v126_v17 }
  0xe3   :  { %v141_v34 = vshrl.u32 %v455_v33, %v126_v17  ;;  %v127_v44 = vshrl.u32 %v450_v19, %v126_v17  ;;  %vm145_vm5 = vcmp.lt.s32.totalorder %v124_v18, 3  ;;  %vm144_vm6 = vcmp.lt.s32.totalorder %v124_v18, 2 }
  0xe4   :  { %v130_v36 = vor.u32 %v129_v23, %v128_v20  ;;  %v133_v37 = vor.u32 %v132_v25, %v131_v22  ;;  %v136_v38 = vor.u32 %v135_v28, %v134_v26  ;;  %v139_v39 = vor.u32 %v138_v31, %v137_v29 }
  0xe5   :  { %v142_v40 = vor.u32 %v141_v34, %v140_v32 }
  0xe6   :  { %v148_v41 = vsel %vm146_vm4, %v136_v38, 2102212464  ;;  %v151_v42 = vsel %vm143_vm3, %v130_v36, %v133_v37  ;;  %v155_v43 = vsel %vm143_vm3, %v133_v37, %v136_v38  ;;  %v152_v45 = vsel %vm146_vm4, %v139_v39, 920167782 }
  0xe7   :  { %v156_v46 = vsel %vm146_vm4, %v142_v40, 1326507024  ;;  %v153_v47 = vsel %vm145_vm5, %v136_v38, %v152_v45  ;;  %v147_v50 = vsel %vm143_vm3, %v127_v44, %v130_v36  ;;  %v149_v51 = vsel %vm145_vm5, %v133_v37, %v148_v41 }
  0xe8   :  { %v157_v48 = vsel %vm145_vm5, %v139_v39, %v156_v46  ;;  %v154_v52 = vsel %vm144_vm6, %v151_v42, %v153_v47  ;;  %v150_v58 = vsel %vm144_vm6, %v147_v50, %v149_v51  ;;  %vm381_vm3 = vcmask 57344  }
  0xe9   :  { %v158_v53 = vsel %vm144_vm6, %v155_v43, %v157_v48  ;;  %v494_v56 = vmul.u32.u64.low %v159_v49, %v154_v52  ;;  %v495_v57 = vmul.u32.u64.high %v159_v49, %v154_v52, %v494_v56  ;;  %v166_v60 = vmul.u32 %v159_v49, %v150_v58 }
  0xea   :  { %v491_v54 = vmul.u32.u64.low %v159_v49, %v158_v53  ;;  %v492_v55 = vmul.u32.u64.high %v159_v49, %v158_v53, %v491_v54  ;;  %vm367_vm4 = vcmask 1041408   ;;  %vm369_vm5 = vcmask 1042432  }
  0xeb   :  { %v169_v59 = vadd.s32 1, %v495_v57  ;;  %vm371_vm6 = vcmask 1043456  }
  0xec   :  { %vm168_vm7 = vc.u32 %v492_v55, %v494_v56  ;;  %v167_v9 = vadd.s32 %v494_v56, %v492_v55 }
  0xed   :  { %v170_v61 = vsel %vm168_vm7, %v169_v59, %v495_v57  ;;  %vm373_vm7 = vcmask 1044480  }
  0xee   :  { %v171_v62 = vadd.s32 %v170_v61, %v166_v60 }
  0xf0   :  { %v172_v63 = vadd.s32 536870912, %v171_v62 }
  0xf2   :  { %v173_v0 = vshrl.u32 %v172_v63, 30 }
  0xf4   :  { %v174_v1 = vshll.u32 %v173_v0, 30  ;;  %v197_v23 = vsub.s32 4, %v173_v0 }
  0xf6   :  { %v175_v2 = vsub.s32 %v171_v62, %v174_v1  ;;  %v198_v26 = vsel %vm113_vm9, %v197_v23, %v173_v0 }
  0xf7   :  { %v200_v27 = vsel %vm112_vm10, 0, %v198_v26 }
  0xf8   :  { %v177_v3 = vsub.s32 0, %v175_v2  ;;  %v307_v28 = vadd.s32 3, %v200_v27  ;;  %v204_v29 = vand.u32 3, %v200_v27 }
  0xfa   :  { %v391_v4 = vmin.u32 %v177_v3, %v175_v2  ;;  %v308_v30 = vand.u32 3, %v307_v28  ;;  %vm209_vm11 = vcmp.eq.s32.totalorder %v204_v29, 2  ;;  %vm206_vm13 = vcmp.eq.s32.totalorder %v204_v29, 0 }
  0xfb   :  { %vm205_vm15 = vcmp.lt.s32.totalorder %v204_v29, 2 }
  0xfc   :  { %v179_v5 = vclz %v391_v4  ;;  %vm313_vm12 = vcmp.eq.s32.totalorder %v308_v30, 2  ;;  %vm310_vm14 = vcmp.eq.s32.totalorder %v308_v30, 0  ;;  %vm309_vm0 = vcmp.lt.s32.totalorder %v308_v30, 2 }
  0xfe   :  { %v392_v6 = vadd.s32 4294967294, %v179_v5 }
 0x100   :  { %vm393_vm8 = vcmp.lt.s32.totalorder %v392_v6, 0 }
 0x101   :  { %v182_v8 = vsel %vm393_vm8, 0, %v392_v6  ;;  %vm375_vm8 = vcmask 1045504  }
 0x102   :  { %v183_v10 = vsub.s32 32, %v182_v8  ;;  %v187_v11 = vsub.s32 4294967266, %v182_v8  ;;  %v184_v12 = vshll.u32 %v175_v2, %v182_v8 }
 0x104   :  { %v185_v14 = vshrl.u32 %v167_v9, %v183_v10  ;;  %v188_v15 = vadd.s32 127, %v187_v11 }
 0x106   :  { %v186_v16 = vor.u32 %v185_v14, %v184_v12  ;;  %v189_v17 = vshll.u32 %v188_v15, 23 }
 0x108   :  { %v190_v18 = vor.u32 4788187, %v189_v17  ;;  %v193_v20 = vcvt.s32.f32 %v186_v16 }
 0x10a   :  { %v191_v19 = vand.u32 2147483647, %v190_v18 }
 0x10c   :  { %v194_v21 = vmul.f32 %v193_v20, %v191_v19 }
 0x10e   :  { %v195_v22 = vxor.u32 2147483648, %v194_v21 }
 0x110   :  { %v196_v24 = vsel %vm113_vm9, %v195_v22, %v194_v21  ;;  %vm377_vm9 = vcmask 1046528  }
 0x111   :  { %v199_v25 = vsel %vm112_vm10, %v485_v7, %v196_v24  ;;  %vm379_vm10 = vcmask 64512  }
 0x112   :  { %420 = vcosq.f32 %v199_v25 }
 0x113   :  { %422 = vsinq.f32 %v199_v25 }
 0x11f   :  { %v421_v31 = vpop.eup %420 }
 0x120   :  { %v423_v32 = vpop.eup %422  ;;  %v210_v33 = vxor.u32 2147483648, %v421_v31 }
 0x121   :  { %v207_v34 = vxor.u32 2147483648, %v423_v32 }
 0x122   :  { %v211_v35 = vsel %vm209_vm11, %v210_v33, %v423_v32  ;;  %v315_v13 = vsel %vm313_vm12, %v210_v33, %v423_v32 }
 0x123   :  { %v208_v36 = vsel %vm206_vm13, %v421_v31, %v207_v34  ;;  %v312_v37 = vsel %vm310_vm14, %v421_v31, %v207_v34 }
 0x124   :  { %v212_v38 = vsel %vm205_vm15, %v208_v36, %v211_v35  ;;  %v316_v39 = vsel %vm309_vm0, %v312_v37, %v315_v13 }
 0x125   :  { %v213_v40 = vsel %vm203_vm1, nan, %v212_v38  ;;  %v317_v41 = vsel %vm203_vm1, nan, %v316_v39 }
 0x126   :  { %v319_v42 = vrot.slane %v213_v40, 1  ;;  %v323_v43 = vrot.slane %v213_v40, 2  ;;  %v327_v44 = vrot.slane %v317_v41, 2  ;;  %v331_v45 = vsub.f32 0.0, %v213_v40 }
 0x127   :  { %v332_v46 = vrot.slane %v317_v41, 1  ;;  %v355_v3 = vrot.slane %v213_v40, 5 }
 0x128   :  { %v321_v47 = vmul.f32 %v319_v42, %v213_v40  ;;  %v322_v48 = vmul.f32 %v319_v42, %v317_v41  ;;  %v329_v49 = vmul.f32 %v327_v44, %v317_v41  ;;  %v336_v51 = vmul.f32 %v323_v43, %v317_v41 }
 0x129   :  { %v334_v50 = vmul.f32 %v332_v46, %v331_v45  ;;  %v340_v52 = vmul.f32 %v327_v44, %v213_v40  ;;  %v343_v53 = vmul.f32 %v323_v43, %v213_v40  ;;  %v338_v62 = vmul.f32 %v332_v46, %v317_v41 }
 0x12a   :  { %v325_v54 = vmul.f32 %v323_v43, %v321_v47  ;;  %v335_v55 = vmul.f32 %v327_v44, %v321_v47  ;;  %v339_v56 = vmul.f32 %v323_v43, %v322_v48  ;;  %v344_v7 = vmul.f32 %v327_v44, %v322_v48 }
 0x12b   :  { %v347_v57 = vrot.slane %v334_v50, 7  ;;  %v353_v2 = vrot.slane %v322_v48, 6  ;;  %v358_v5 = vrot.slane %v338_v62, 4  ;;  %v363_v10 = vrot.slane %v338_v62, 1 }
 0x12c   :  { %v330_v58 = vsub.f32 %v325_v54, %v329_v49  ;;  %v337_v59 = vadd.f32 %v336_v51, %v335_v55  ;;  %v341_v60 = vadd.f32 %v340_v52, %v339_v56  ;;  %v345_v61 = vsub.f32 %v343_v53, %v344_v7 }
 0x12e   :  { %v342_v63 = vsub.f32 0.0, %v341_v60  ;;  %v350_v0 = vrot.slane %v337_v59, 6  ;;  %v366_v1 = vsel %vm365_vm2, %v330_v58, %v347_v57  ;;  %382 = vst.msk [vmem:[%s515_s3 + $0x8] sm:$0x1] %vm381_vm3, %v345_v61 }
 0x130   :  { %v368_v4 = vsel %vm367_vm4, %v366_v1, %v350_v0  ;;  %v361_v8 = vrot.slane %v342_v63, 2 }
 0x131   :  { %v370_v6 = vsel %vm369_vm5, %v368_v4, %v353_v2 }
 0x132   :  { %v372_v9 = vsel %vm371_vm6, %v370_v6, %v355_v3 }
 0x133   :  { %v374_v11 = vsel %vm373_vm7, %v372_v9, %v358_v5 }
 0x134   :  { %v376_v12 = vsel %vm375_vm8, %v374_v11, %v361_v8 }
 0x135   :  { %v378_v14 = vsel %vm377_vm9, %v376_v12, %v363_v10 }
 0x136   :  { %380 = vst.msk [vmem:[%s515_s3] sm:$0xff] %vm379_vm10, %v378_v14 }
 0x137   :  { %387 = vsyncpa [#allocation3], 1 }

</bundles_post_ra>
